<compile_context>
chip_gen: v6e
topology: v6e:2x2x1
jax: 0.10.0
libtpu: 0.0.40
codegen_flags: <defaults>
</compile_context>

<pallas_src>
import functools

import jax
import jax.numpy as jnp
from jax.experimental import pallas as pl
from jax.experimental.pallas import tpu as pltpu

_LANE = 128


def _round_up(n, m=_LANE):
    return ((n + m - 1) // m) * m


def _pad_axis(a, axis, target, value=0.0):
    """Const-pad `a` along `axis` up to length `target` (no-op if already >=)."""
    pad = target - a.shape[axis]
    if pad <= 0:
        return a
    widths = [(0, 0)] * a.ndim
    widths[axis] = (0, pad)
    return jnp.pad(a, widths, constant_values=value)


def _fused_mlp_kernel(*refs, num_layers, eps, matmul_dtype):
    """refs = (x, [Wb, gamma, beta] * num_layers, out); all fully resident in VMEM.

    Per layer: y = h @ Wb  (Wb pre-binarized, pre-transposed, bf16, lane-dense),
    then BatchNorm1d training semantics (batch mean, biased batch variance) with
    affine gamma/beta, then ReLU on every layer except the last.
    """
    x_ref = refs[0]
    o_ref = refs[-1]
    layer_refs = refs[1:-1]

    h = x_ref[...].astype(jnp.float32)                       # (B, Fin_pad)
    for i in range(num_layers):
        w_ref = layer_refs[3 * i]                            # (Fin_pad, Fout_pad) bf16
        g_ref = layer_refs[3 * i + 1]                        # (1, Fout_pad) f32
        b_ref = layer_refs[3 * i + 2]                        # (1, Fout_pad) f32

        # MXU matmul: bf16 operands (+-1 weights exact), f32 accumulation.
        y = jnp.dot(h.astype(matmul_dtype), w_ref[...],
                    preferred_element_type=jnp.float32)      # (B, Fout_pad)

        # BatchNorm1d (train): single-pass batch mean / biased batch variance.
        mean = jnp.mean(y, axis=0, keepdims=True)
        var = jnp.maximum(jnp.mean(y * y, axis=0, keepdims=True) - mean * mean, 0.0)
        out = (y - mean) * jax.lax.rsqrt(var + eps) * g_ref[...] + b_ref[...]

        if i < num_layers - 1:
            out = jnp.maximum(out, 0.0)                      # ReLU (layers 1..3)
        h = out

    o_ref[...] = h.astype(o_ref.dtype)


def init_params(key, in_features, num_units, out_features):
    """Deterministic init mimicking nn.Linear kaiming-uniform + BN affine defaults."""
    dims = [(num_units, in_features),
            (num_units, num_units),
            (num_units, num_units),
            (out_features, num_units)]
    params = []
    for d in dims:
        key, sub = jax.random.split(key)
        bound = 1.0 / jnp.sqrt(d[1])
        w = jax.random.uniform(sub, d, jnp.float32, -bound, bound)
        gamma = jnp.ones((1, d[0]), jnp.float32)             # BN affine=True defaults
        beta = jnp.zeros((1, d[0]), jnp.float32)
        params.append((w, gamma, beta))
    return params


def prepare_params(params, matmul_dtype=jnp.bfloat16):
    """One-time prep outside the kernel: binarize, transpose to (Fin, Fout), pad to 128 lanes.

    Padded weight rows/cols are zero, padded gamma=1 / beta=0, so padded output
    lanes are exactly zero and contribute nothing downstream.
    """
    prepared = []
    for w, gamma, beta in params:
        fout, fin = w.shape
        fin_p, fout_p = _round_up(fin), _round_up(fout)
        wb = jnp.sign(w).T                                   # (Fin, Fout) in {-1, 0, +1} (matches torch.sign)
        wb = _pad_axis(_pad_axis(wb, 0, fin_p), 1, fout_p).astype(matmul_dtype)
        g = _pad_axis(gamma.reshape(1, fout), 1, fout_p, 1.0).astype(jnp.float32)
        b = _pad_axis(beta.reshape(1, fout), 1, fout_p, 0.0).astype(jnp.float32)
        prepared.append((wb, g, b))
    return prepared


def fused_mlp_binaryconnect(x2d, prepared, *, eps=1e-4, matmul_dtype=jnp.bfloat16):
    """x2d: (B, Fin) f32; prepared: [(Wb (FinP,FoutP) bf16, gamma (1,FoutP), beta (1,FoutP))]."""
    B = x2d.shape[0]
    fin_p = prepared[0][0].shape[0]
    fout_p = prepared[-1][0].shape[1]
    x_pad = _pad_axis(x2d.astype(jnp.float32), 1, fin_p)

    flat = []
    for wb, g, b in prepared:
        flat += [wb, g, b]

    kernel = functools.partial(_fused_mlp_kernel, num_layers=len(prepared),
                               eps=eps, matmul_dtype=matmul_dtype)
    vmem = pl.BlockSpec(memory_space=pltpu.MemorySpace.VMEM)
    return pl.pallas_call(
        kernel,
        out_shape=jax.ShapeDtypeStruct((B, fout_p), jnp.float32),
        in_specs=[vmem] * (1 + len(flat)),
        out_specs=vmem,
    )(x_pad, *flat)


def mlp_binaryconnect_m3_forward(x, prepared, in_features, out_features,
                                 eps=1e-4, matmul_dtype=jnp.bfloat16):
    # x.view(-1, in_features); dropout(p=0) == identity.
    h = jnp.reshape(x, (-1, in_features))
    out_pad = fused_mlp_binaryconnect(h, prepared, eps=eps, matmul_dtype=matmul_dtype)
    return out_pad[:, :out_features]                         # strip lane padding of final layer


if __name__ == "__main__":
    # Small MNIST-like config: 8x8 single-channel images, hidden=128, 10 classes.
    B, C, H, W = 8, 1, 8, 8
    in_features = C * H * W          # 64  (padded to 128 lanes internally)
    num_units = 128
    out_features = 10                # padded to 128 lanes internally, sliced back
    eps = 1e-4                       # module default eps=0.0001

    key = jax.random.PRNGKey(0)
    key, kx = jax.random.split(key)
    x = jax.random.normal(kx, (B, C, H, W), jnp.float32)     # NCHW input, flattened in forward

    params = init_params(key, in_features, num_units, out_features)
    prepared = prepare_params(params)                        # sign + transpose + pad + bf16, once

    out = mlp_binaryconnect_m3_forward(x, prepared, in_features, out_features, eps=eps)
    out = jax.block_until_ready(out)
    assert out.shape == (B, out_features), out.shape
    assert bool(jnp.all(jnp.isfinite(out)))
    print("KERNEL_OK")
</pallas_src>

<mosaic_0001>
module attributes {stable_mosaic.version = 11 : i64} {
  func.func @_fused_mlp_kernel(%arg0: memref<8x128xf32, #tpu.memory_space<vmem>>, %arg1: memref<128x128xbf16, #tpu.memory_space<vmem>>, %arg2: memref<1x128xf32, #tpu.memory_space<vmem>>, %arg3: memref<1x128xf32, #tpu.memory_space<vmem>>, %arg4: memref<128x128xbf16, #tpu.memory_space<vmem>>, %arg5: memref<1x128xf32, #tpu.memory_space<vmem>>, %arg6: memref<1x128xf32, #tpu.memory_space<vmem>>, %arg7: memref<128x128xbf16, #tpu.memory_space<vmem>>, %arg8: memref<1x128xf32, #tpu.memory_space<vmem>>, %arg9: memref<1x128xf32, #tpu.memory_space<vmem>>, %arg10: memref<128x128xbf16, #tpu.memory_space<vmem>>, %arg11: memref<1x128xf32, #tpu.memory_space<vmem>>, %arg12: memref<1x128xf32, #tpu.memory_space<vmem>>, %arg13: memref<8x128xf32, #tpu.memory_space<vmem>>) attributes {dimension_semantics = [], scalar_prefetch = 0 : i64, scratch_operands = 0 : i64, tpu.core_type = #tpu.core_type<tc>} {
    %c0 = arith.constant 0 : index
    %c0_0 = arith.constant 0 : index
    %0 = vector.load %arg0[%c0, %c0_0] : memref<8x128xf32, #tpu.memory_space<vmem>>, vector<8x128xf32>
    %1 = arith.truncf %0 : vector<8x128xf32> to vector<8x128xbf16>
    %c0_1 = arith.constant 0 : index
    %c0_2 = arith.constant 0 : index
    %2 = vector.load %arg1[%c0_1, %c0_2] : memref<128x128xbf16, #tpu.memory_space<vmem>>, vector<128x128xbf16>
    %cst = arith.constant dense<0.000000e+00> : vector<8x128xf32>
    %3 = tpu.matmul %1, %2, %cst {dimension_numbers = #tpu.dot_dimension_numbers<[1], [0], [0], [1], [0, 0, 1, 1], [], []>} : vector<8x128xbf16>, vector<128x128xbf16>, vector<8x128xf32> -> vector<8x128xf32>
    %cst_3 = arith.constant dense<0.000000e+00> : vector<128xf32>
    %4 = vector.multi_reduction <add>, %3, %cst_3 [0] : vector<8x128xf32> to vector<128xf32>
    %5 = vector.shape_cast %4 : vector<128xf32> to vector<1x128xf32>
    %cst_4 = arith.constant 8.000000e+00 : f32
    %6 = vector.broadcast %cst_4 : f32 to vector<1x128xf32>
    %7 = arith.divf %5, %6 : vector<1x128xf32>
    %8 = arith.mulf %3, %3 : vector<8x128xf32>
    %cst_5 = arith.constant dense<0.000000e+00> : vector<128xf32>
    %9 = vector.multi_reduction <add>, %8, %cst_5 [0] : vector<8x128xf32> to vector<128xf32>
    %10 = vector.shape_cast %9 : vector<128xf32> to vector<1x128xf32>
    %cst_6 = arith.constant 8.000000e+00 : f32
    %11 = vector.broadcast %cst_6 : f32 to vector<1x128xf32>
    %12 = arith.divf %10, %11 : vector<1x128xf32>
    %13 = arith.mulf %7, %7 : vector<1x128xf32>
    %14 = arith.subf %12, %13 : vector<1x128xf32>
    %cst_7 = arith.constant 0.000000e+00 : f32
    %15 = vector.broadcast %cst_7 : f32 to vector<1x128xf32>
    %16 = arith.maximumf %14, %15 : vector<1x128xf32>
    %17 = vector.broadcast %7 : vector<1x128xf32> to vector<8x128xf32>
    %18 = arith.subf %3, %17 : vector<8x128xf32>
    %cst_8 = arith.constant 9.99999974E-5 : f32
    %19 = vector.broadcast %cst_8 : f32 to vector<1x128xf32>
    %20 = arith.addf %16, %19 : vector<1x128xf32>
    %21 = math.rsqrt %20 : vector<1x128xf32>
    %22 = vector.broadcast %21 : vector<1x128xf32> to vector<8x128xf32>
    %23 = arith.mulf %18, %22 : vector<8x128xf32>
    %c0_9 = arith.constant 0 : index
    %c0_10 = arith.constant 0 : index
    %24 = vector.load %arg2[%c0_9, %c0_10] : memref<1x128xf32, #tpu.memory_space<vmem>>, vector<1x128xf32>
    %25 = vector.broadcast %24 : vector<1x128xf32> to vector<8x128xf32>
    %26 = arith.mulf %23, %25 : vector<8x128xf32>
    %c0_11 = arith.constant 0 : index
    %c0_12 = arith.constant 0 : index
    %27 = vector.load %arg3[%c0_11, %c0_12] : memref<1x128xf32, #tpu.memory_space<vmem>>, vector<1x128xf32>
    %28 = vector.broadcast %27 : vector<1x128xf32> to vector<8x128xf32>
    %29 = arith.addf %26, %28 : vector<8x128xf32>
    %cst_13 = arith.constant 0.000000e+00 : f32
    %30 = vector.broadcast %cst_13 : f32 to vector<8x128xf32>
    %31 = arith.maximumf %29, %30 : vector<8x128xf32>
    %32 = arith.truncf %31 : vector<8x128xf32> to vector<8x128xbf16>
    %c0_14 = arith.constant 0 : index
    %c0_15 = arith.constant 0 : index
    %33 = vector.load %arg4[%c0_14, %c0_15] : memref<128x128xbf16, #tpu.memory_space<vmem>>, vector<128x128xbf16>
    %cst_16 = arith.constant dense<0.000000e+00> : vector<8x128xf32>
    %34 = tpu.matmul %32, %33, %cst_16 {dimension_numbers = #tpu.dot_dimension_numbers<[1], [0], [0], [1], [0, 0, 1, 1], [], []>} : vector<8x128xbf16>, vector<128x128xbf16>, vector<8x128xf32> -> vector<8x128xf32>
    %cst_17 = arith.constant dense<0.000000e+00> : vector<128xf32>
    %35 = vector.multi_reduction <add>, %34, %cst_17 [0] : vector<8x128xf32> to vector<128xf32>
    %36 = vector.shape_cast %35 : vector<128xf32> to vector<1x128xf32>
    %cst_18 = arith.constant 8.000000e+00 : f32
    %37 = vector.broadcast %cst_18 : f32 to vector<1x128xf32>
    %38 = arith.divf %36, %37 : vector<1x128xf32>
    %39 = arith.mulf %34, %34 : vector<8x128xf32>
    %cst_19 = arith.constant dense<0.000000e+00> : vector<128xf32>
    %40 = vector.multi_reduction <add>, %39, %cst_19 [0] : vector<8x128xf32> to vector<128xf32>
    %41 = vector.shape_cast %40 : vector<128xf32> to vector<1x128xf32>
    %cst_20 = arith.constant 8.000000e+00 : f32
    %42 = vector.broadcast %cst_20 : f32 to vector<1x128xf32>
    %43 = arith.divf %41, %42 : vector<1x128xf32>
    %44 = arith.mulf %38, %38 : vector<1x128xf32>
    %45 = arith.subf %43, %44 : vector<1x128xf32>
    %cst_21 = arith.constant 0.000000e+00 : f32
    %46 = vector.broadcast %cst_21 : f32 to vector<1x128xf32>
    %47 = arith.maximumf %45, %46 : vector<1x128xf32>
    %48 = vector.broadcast %38 : vector<1x128xf32> to vector<8x128xf32>
    %49 = arith.subf %34, %48 : vector<8x128xf32>
    %cst_22 = arith.constant 9.99999974E-5 : f32
    %50 = vector.broadcast %cst_22 : f32 to vector<1x128xf32>
    %51 = arith.addf %47, %50 : vector<1x128xf32>
    %52 = math.rsqrt %51 : vector<1x128xf32>
    %53 = vector.broadcast %52 : vector<1x128xf32> to vector<8x128xf32>
    %54 = arith.mulf %49, %53 : vector<8x128xf32>
    %c0_23 = arith.constant 0 : index
    %c0_24 = arith.constant 0 : index
    %55 = vector.load %arg5[%c0_23, %c0_24] : memref<1x128xf32, #tpu.memory_space<vmem>>, vector<1x128xf32>
    %56 = vector.broadcast %55 : vector<1x128xf32> to vector<8x128xf32>
    %57 = arith.mulf %54, %56 : vector<8x128xf32>
    %c0_25 = arith.constant 0 : index
    %c0_26 = arith.constant 0 : index
    %58 = vector.load %arg6[%c0_25, %c0_26] : memref<1x128xf32, #tpu.memory_space<vmem>>, vector<1x128xf32>
    %59 = vector.broadcast %58 : vector<1x128xf32> to vector<8x128xf32>
    %60 = arith.addf %57, %59 : vector<8x128xf32>
    %cst_27 = arith.constant 0.000000e+00 : f32
    %61 = vector.broadcast %cst_27 : f32 to vector<8x128xf32>
    %62 = arith.maximumf %60, %61 : vector<8x128xf32>
    %63 = arith.truncf %62 : vector<8x128xf32> to vector<8x128xbf16>
    %c0_28 = arith.constant 0 : index
    %c0_29 = arith.constant 0 : index
    %64 = vector.load %arg7[%c0_28, %c0_29] : memref<128x128xbf16, #tpu.memory_space<vmem>>, vector<128x128xbf16>
    %cst_30 = arith.constant dense<0.000000e+00> : vector<8x128xf32>
    %65 = tpu.matmul %63, %64, %cst_30 {dimension_numbers = #tpu.dot_dimension_numbers<[1], [0], [0], [1], [0, 0, 1, 1], [], []>} : vector<8x128xbf16>, vector<128x128xbf16>, vector<8x128xf32> -> vector<8x128xf32>
    %cst_31 = arith.constant dense<0.000000e+00> : vector<128xf32>
    %66 = vector.multi_reduction <add>, %65, %cst_31 [0] : vector<8x128xf32> to vector<128xf32>
    %67 = vector.shape_cast %66 : vector<128xf32> to vector<1x128xf32>
    %cst_32 = arith.constant 8.000000e+00 : f32
    %68 = vector.broadcast %cst_32 : f32 to vector<1x128xf32>
    %69 = arith.divf %67, %68 : vector<1x128xf32>
    %70 = arith.mulf %65, %65 : vector<8x128xf32>
    %cst_33 = arith.constant dense<0.000000e+00> : vector<128xf32>
    %71 = vector.multi_reduction <add>, %70, %cst_33 [0] : vector<8x128xf32> to vector<128xf32>
    %72 = vector.shape_cast %71 : vector<128xf32> to vector<1x128xf32>
    %cst_34 = arith.constant 8.000000e+00 : f32
    %73 = vector.broadcast %cst_34 : f32 to vector<1x128xf32>
    %74 = arith.divf %72, %73 : vector<1x128xf32>
    %75 = arith.mulf %69, %69 : vector<1x128xf32>
    %76 = arith.subf %74, %75 : vector<1x128xf32>
    %cst_35 = arith.constant 0.000000e+00 : f32
    %77 = vector.broadcast %cst_35 : f32 to vector<1x128xf32>
    %78 = arith.maximumf %76, %77 : vector<1x128xf32>
    %79 = vector.broadcast %69 : vector<1x128xf32> to vector<8x128xf32>
    %80 = arith.subf %65, %79 : vector<8x128xf32>
    %cst_36 = arith.constant 9.99999974E-5 : f32
    %81 = vector.broadcast %cst_36 : f32 to vector<1x128xf32>
    %82 = arith.addf %78, %81 : vector<1x128xf32>
    %83 = math.rsqrt %82 : vector<1x128xf32>
    %84 = vector.broadcast %83 : vector<1x128xf32> to vector<8x128xf32>
    %85 = arith.mulf %80, %84 : vector<8x128xf32>
    %c0_37 = arith.constant 0 : index
    %c0_38 = arith.constant 0 : index
    %86 = vector.load %arg8[%c0_37, %c0_38] : memref<1x128xf32, #tpu.memory_space<vmem>>, vector<1x128xf32>
    %87 = vector.broadcast %86 : vector<1x128xf32> to vector<8x128xf32>
    %88 = arith.mulf %85, %87 : vector<8x128xf32>
    %c0_39 = arith.constant 0 : index
    %c0_40 = arith.constant 0 : index
    %89 = vector.load %arg9[%c0_39, %c0_40] : memref<1x128xf32, #tpu.memory_space<vmem>>, vector<1x128xf32>
    %90 = vector.broadcast %89 : vector<1x128xf32> to vector<8x128xf32>
    %91 = arith.addf %88, %90 : vector<8x128xf32>
    %cst_41 = arith.constant 0.000000e+00 : f32
    %92 = vector.broadcast %cst_41 : f32 to vector<8x128xf32>
    %93 = arith.maximumf %91, %92 : vector<8x128xf32>
    %94 = arith.truncf %93 : vector<8x128xf32> to vector<8x128xbf16>
    %c0_42 = arith.constant 0 : index
    %c0_43 = arith.constant 0 : index
    %95 = vector.load %arg10[%c0_42, %c0_43] : memref<128x128xbf16, #tpu.memory_space<vmem>>, vector<128x128xbf16>
    %cst_44 = arith.constant dense<0.000000e+00> : vector<8x128xf32>
    %96 = tpu.matmul %94, %95, %cst_44 {dimension_numbers = #tpu.dot_dimension_numbers<[1], [0], [0], [1], [0, 0, 1, 1], [], []>} : vector<8x128xbf16>, vector<128x128xbf16>, vector<8x128xf32> -> vector<8x128xf32>
    %cst_45 = arith.constant dense<0.000000e+00> : vector<128xf32>
    %97 = vector.multi_reduction <add>, %96, %cst_45 [0] : vector<8x128xf32> to vector<128xf32>
    %98 = vector.shape_cast %97 : vector<128xf32> to vector<1x128xf32>
    %cst_46 = arith.constant 8.000000e+00 : f32
    %99 = vector.broadcast %cst_46 : f32 to vector<1x128xf32>
    %100 = arith.divf %98, %99 : vector<1x128xf32>
    %101 = arith.mulf %96, %96 : vector<8x128xf32>
    %cst_47 = arith.constant dense<0.000000e+00> : vector<128xf32>
    %102 = vector.multi_reduction <add>, %101, %cst_47 [0] : vector<8x128xf32> to vector<128xf32>
    %103 = vector.shape_cast %102 : vector<128xf32> to vector<1x128xf32>
    %cst_48 = arith.constant 8.000000e+00 : f32
    %104 = vector.broadcast %cst_48 : f32 to vector<1x128xf32>
    %105 = arith.divf %103, %104 : vector<1x128xf32>
    %106 = arith.mulf %100, %100 : vector<1x128xf32>
    %107 = arith.subf %105, %106 : vector<1x128xf32>
    %cst_49 = arith.constant 0.000000e+00 : f32
    %108 = vector.broadcast %cst_49 : f32 to vector<1x128xf32>
    %109 = arith.maximumf %107, %108 : vector<1x128xf32>
    %110 = vector.broadcast %100 : vector<1x128xf32> to vector<8x128xf32>
    %111 = arith.subf %96, %110 : vector<8x128xf32>
    %cst_50 = arith.constant 9.99999974E-5 : f32
    %112 = vector.broadcast %cst_50 : f32 to vector<1x128xf32>
    %113 = arith.addf %109, %112 : vector<1x128xf32>
    %114 = math.rsqrt %113 : vector<1x128xf32>
    %115 = vector.broadcast %114 : vector<1x128xf32> to vector<8x128xf32>
    %116 = arith.mulf %111, %115 : vector<8x128xf32>
    %c0_51 = arith.constant 0 : index
    %c0_52 = arith.constant 0 : index
    %117 = vector.load %arg11[%c0_51, %c0_52] : memref<1x128xf32, #tpu.memory_space<vmem>>, vector<1x128xf32>
    %118 = vector.broadcast %117 : vector<1x128xf32> to vector<8x128xf32>
    %119 = arith.mulf %116, %118 : vector<8x128xf32>
    %c0_53 = arith.constant 0 : index
    %c0_54 = arith.constant 0 : index
    %120 = vector.load %arg12[%c0_53, %c0_54] : memref<1x128xf32, #tpu.memory_space<vmem>>, vector<1x128xf32>
    %121 = vector.broadcast %120 : vector<1x128xf32> to vector<8x128xf32>
    %122 = arith.addf %119, %121 : vector<8x128xf32>
    %c0_55 = arith.constant 0 : index
    %c0_56 = arith.constant 0 : index
    %123 = vector.load %arg13[%c0_55, %c0_56] : memref<8x128xf32, #tpu.memory_space<vmem>>, vector<8x128xf32>
    tpu.vector_store %arg13[%c0_55, %c0_56], %122 {strides = array<i32>} : memref<8x128xf32, #tpu.memory_space<vmem>>, vector<8x128xf32>,
    return
  }
}

</mosaic_0001>

<bundles_post_ra>
// kernel: tpu_custom_call.1
= control target key start
LH: loop header
LB: loop body
LE: loop exit
PB: predicated region body
PF: predicated region fallthrough
CT: control target
= control target key end

     0   :  { %18 = vsyncpa [#allocation3], 0  ;;  %s1215_s0 = inlined_call_operand.hbm [shape: f32[8,128], index: 0, kind: input, shape index: {}]   ;;  %s1216_s1 = inlined_call_operand.hbm [shape: bf16[128,128], index: 1, kind: input, shape index: {}]   ;;  %s1217_s2 = inlined_call_operand.vmem [shape: f32[1,128], index: 2, kind: input, shape index: {}]   ;;  %s1218_s3 = inlined_call_operand.vmem [shape: f32[1,128], index: 3, kind: input, shape index: {}]   ;;  %s1219_s4 = inlined_call_operand.hbm [shape: bf16[128,128], index: 4, kind: input, shape index: {}]   ;;  %s1220_s5 = inlined_call_operand.vmem [shape: f32[1,128], index: 5, kind: input, shape index: {}]   ;;  %s1221_s6 = inlined_call_operand.vmem [shape: f32[1,128], index: 6, kind: input, shape index: {}]   ;;  %s1222_s7 = inlined_call_operand.hbm [shape: bf16[128,128], index: 7, kind: input, shape index: {}]   ;;  %s1223_s8 = inlined_call_operand.vmem [shape: f32[1,128], index: 8, kind: input, shape index: {}]   ;;  %s1224_s9 = inlined_call_operand.vmem [shape: f32[1,128], index: 9, kind: input, shape index: {}]   ;;  %s1225_s10 = inlined_call_operand.hbm [shape: bf16[128,128], index: 10, kind: input, shape index: {}]   ;;  %s1226_s11 = inlined_call_operand.vmem [shape: f32[1,128], index: 11, kind: input, shape index: {}]   ;;  %s1227_s12 = inlined_call_operand.vmem [shape: f32[1,128], index: 12, kind: input, shape index: {}]   ;;  %s1228_s13 = inlined_call_operand.hbm [shape: f32[8,128], index: 13, kind: output, shape index: {}]  }
   0x1   :  { %19 = vsyncpa [#allocation6], 0 }
   0x2   :  { %20 = vsyncpa [#allocation9], 0 }
   0x3   :  { %21 = vsyncpa [#allocation4], 0  ;;  %s1041_s25 = smov [#allocation5]  }
   0x4   :  { %s37_s26 = sshll.u32 %s1041_s25, 4  ;;  %s38_s26 = int_to_ptr.vmem [resolvable:$true] %s37_s26 }
   0x5   :  { %s921_s27 = scalar_lea.vmem %s38_s26, 1024  ;;  %p926_p1 = scmp.lt.s32.totalorder %s38_s26, %s38_s26 }
   0x6   :  { %p922_p0 = scmp.ne.s32.totalorder %s38_s26, %s921_s27  ;;  %p927_p2 = scmp.lt.s32.totalorder %s921_s27, %s921_s27 }
   0x8   :  { %p928_p3 = por %p927_p2, %p926_p1 }
   0xa   :  { %p929_p4 = pnand %p928_p3, %p922_p0 }
   0xc   :  { %932 = shalt.err (!%p929_p4)
}
   0xd   :  { %s1042_s28 = smov 64   ;;  %s1043_s29 = smov 4  }
   0xe   :  { %43 = dma.hbm_to_vmem [thread:$0]  %s1216_s1, 1024, %s38_s26, [#allocation6], %s1042_s28, %s1042_s28, %s1043_s29  }
   0xf   :  { %s1044_s15 = smov [#allocation8]   ;;  %s1045_s17 = smov [#allocation2]  }
  0x10   :  { %s69_s16 = sshll.u32 %s1044_s15, 4  ;;  %s28_s18 = sshll.u32 %s1045_s17, 4  ;;  %s70_s16 = int_to_ptr.vmem [resolvable:$true] %s69_s16  ;;  %s29_s18 = int_to_ptr.vmem [resolvable:$true] %s28_s18 }
  0x11   :  { %s941_s19 = scalar_lea.vmem %s70_s16, 1024  ;;  %p946_p6 = scmp.lt.s32.totalorder %s70_s16, %s70_s16 }
  0x12   :  { %p942_p5 = scmp.ne.s32.totalorder %s70_s16, %s941_s19  ;;  %p947_p7 = scmp.lt.s32.totalorder %s941_s19, %s941_s19 }
  0x14   :  { %p948_p8 = por %p947_p7, %p946_p6 }
  0x16   :  { %p949_p9 = pnand %p948_p8, %p942_p5 }
  0x18   :  { %952 = shalt.err (!%p949_p9)
}
  0x19   :  { %75 = dma.hbm_to_vmem [thread:$0]  %s1222_s7, 1024, %s70_s16, [#allocation9], %s1042_s28, %s1042_s28, %s1043_s29  }
  0x1a   :  { %s961_s1 = scalar_lea.vmem %s29_s18, 128  ;;  %p966_p11 = scmp.lt.s32.totalorder %s29_s18, %s29_s18 }
  0x1b   :  { %p962_p10 = scmp.ne.s32.totalorder %s29_s18, %s961_s1  ;;  %p967_p12 = scmp.lt.s32.totalorder %s961_s1, %s961_s1 }
  0x1d   :  { %p968_p13 = por %p967_p12, %p966_p11 }
  0x1f   :  { %p969_p0 = pnand %p968_p13, %p962_p10 }
  0x21   :  { %972 = shalt.err (!%p969_p0)
}
  0x22   :  { %31 = dma.hbm_to_vmem [thread:$0]  %s1215_s0, 128, %s29_s18, [#allocation3]  }
  0x23   :  { %s1046_s24 = smov [#allocation7]   ;;  %s1047_s26 = smov [#allocation10]  }
  0x24   :  { %s53_s25 = sshll.u32 %s1046_s24, 4  ;;  %s85_s27 = sshll.u32 %s1047_s26, 4  ;;  %s54_s25 = int_to_ptr.vmem [resolvable:$true] %s53_s25  ;;  %s86_s27 = int_to_ptr.vmem [resolvable:$true] %s85_s27 }
  0x25   :  { %s981_s30 = scalar_lea.vmem %s54_s25, 1024  ;;  %p986_p2 = scmp.lt.s32.totalorder %s54_s25, %s54_s25 }
  0x26   :  { %p982_p1 = scmp.ne.s32.totalorder %s54_s25, %s981_s30  ;;  %p987_p3 = scmp.lt.s32.totalorder %s981_s30, %s981_s30 }
  0x28   :  { %p988_p4 = por %p987_p3, %p986_p2 }
  0x2a   :  { %p989_p5 = pnand %p988_p4, %p982_p1 }
  0x2c   :  { %992 = shalt.err (!%p989_p5)
}
  0x2d   :  { %59 = dma.hbm_to_vmem [thread:$0]  %s1219_s4, 1024, %s54_s25, [#allocation6], %s1042_s28, %s1042_s28, %s1043_s29  }
  0x2e   :  { %s1001_s0 = scalar_lea.vmem %s86_s27, 1024  ;;  %p1006_p7 = scmp.lt.s32.totalorder %s86_s27, %s86_s27 }
  0x2f   :  { %p1002_p6 = scmp.ne.s32.totalorder %s86_s27, %s1001_s0  ;;  %p1007_p8 = scmp.lt.s32.totalorder %s1001_s0, %s1001_s0 }
  0x31   :  { %p1008_p9 = por %p1007_p8, %p1006_p7 }
  0x33   :  { %p1009_p10 = pnand %p1008_p9, %p1002_p6 }
  0x35   :  { %1012 = shalt.err (!%p1009_p10)
}
  0x36   :  { %91 = dma.hbm_to_vmem [thread:$0]  %s1225_s10, 1024, %s86_s27, [#allocation9], %s1042_s28, %s1042_s28, %s1043_s29  }
  0x37   :  { %1033 = dma.done.wait [#allocation3], 128  }
  0x38   :  { %1034 = vsyncadd [#allocation3], 4294967168 }
  0x39   :  { %1035 = dma.done.wait [#allocation6], 2048  }
  0x3a   :  { %1036 = vsyncadd [#allocation6], 4294965248 }
  0x3b   :  { %1037 = dma.done.wait [#allocation9], 2048  }
  0x3c   :  { %1038 = vsyncadd [#allocation9], 4294965248  ;;  %v1048_v0 = vmov 0.0   ;;  %vm1049_vm0 = vmmov 0   ;;  %v873_v1 = vld [vmem:[#allocation5 + $0x38] sm:$0xff]   ;;  %v874_v2 = vld [vmem:[#allocation5 + $0x30] sm:$0xff]  }
  0x3d   :  { %783 = vmatprep.subr.bf16.mxu0 %v1048_v0  ;;  %799 = vmatprep.mubr.msk.bf16.mxu0 %vm1049_vm0, %v1048_v0  ;;  %v875_v3 = vld [vmem:[#allocation5 + $0x28] sm:$0xff]   ;;  %v876_v4 = vld [vmem:[#allocation5 + $0x20] sm:$0xff]   ;;  %v877_v5 = vld [vmem:[#allocation5 + $0x18] sm:$0xff]   ;;  %s1050_s22 = smov [#allocation11]  }
  0x3e   :  { %803 = vmatprep.subr.bf16.mxu1 %v1048_v0  ;;  %819 = vmatprep.mubr.msk.bf16.mxu1 %vm1049_vm0, %v1048_v0  ;;  %v878_v6 = vld [vmem:[#allocation5 + $0x10] sm:$0xff]   ;;  %v879_v7 = vld [vmem:[#allocation5 + $0x8] sm:$0xff]   ;;  %v880_v8 = vld [vmem:[#allocation5] sm:$0xff]   ;;  %s696_s23 = sshll.u32 %s1050_s22, 4  ;;  %s697_s23 = int_to_ptr.vmem [resolvable:$true] %s696_s23 }
  0x3f   :  { %784 = vmatpush3.bf16.msra.mxu0 %v873_v1  ;;  %v112_v9 = vld [vmem:[#allocation2] sm:$0xff]  ;;  %v882_v12 = vld [vmem:[#allocation7 + $0x30] sm:$0xff]   ;;  %v883_v13 = vld [vmem:[#allocation7 + $0x28] sm:$0xff]   ;;  %s1013_s24 = scalar_lea.vmem %s697_s23, 128  ;;  %p1018_p12 = scmp.lt.s32.totalorder %s697_s23, %s697_s23 }
  0x40   :  { %785 = vmatprep.subr.bf16.mxu0 %v1048_v0  ;;  %v113_v10 = vpack.c.bf16 %v112_v9, %v112_v9  ;;  %v881_v11 = vld [vmem:[#allocation7 + $0x38] sm:$0xff]   ;;  %v884_v14 = vld [vmem:[#allocation7 + $0x20] sm:$0xff]   ;;  %v886_v16 = vld [vmem:[#allocation7 + $0x10] sm:$0xff]   ;;  %p1014_p11 = scmp.ne.s32.totalorder %s697_s23, %s1013_s24  ;;  %p1019_p13 = scmp.lt.s32.totalorder %s1013_s24, %s1013_s24 }
  0x41   :  { %804 = vmatpush3.bf16.msra.mxu1 %v881_v11  ;;  %v885_v15 = vld [vmem:[#allocation7 + $0x18] sm:$0xff]   ;;  %v887_v17 = vld [vmem:[#allocation7 + $0x8] sm:$0xff]   ;;  %v888_v18 = vld [vmem:[#allocation7] sm:$0xff]  }
  0x42   :  { %805 = vmatprep.subr.bf16.mxu1 %v1048_v0  ;;  %v715_v44 = vld [vmem:[%s1217_s2] ss:$0 sm:$0xff]  ;;  %v890_v52 = vld [vmem:[#allocation8 + $0x30] sm:$0xff]   ;;  %v891_v53 = vld [vmem:[#allocation8 + $0x28] sm:$0xff]   ;;  %p1020_p0 = por %p1019_p13, %p1018_p12 }
  0x43   :  { %786 = vmatpush3.bf16.msra.mxu0 %v874_v2  ;;  %v716_v46 = vld [vmem:[%s1218_s3] ss:$0 sm:$0xff]  ;;  %v892_v54 = vld [vmem:[#allocation8 + $0x20] sm:$0xff]   ;;  %v894_v56 = vld [vmem:[#allocation8 + $0x10] sm:$0xff]  }
  0x44   :  { %787 = vmatprep.subr.bf16.mxu0 %v1048_v0  ;;  %v889_v51 = vld [vmem:[#allocation8 + $0x38] sm:$0xff]   ;;  %v895_v57 = vld [vmem:[#allocation8 + $0x8] sm:$0xff]   ;;  %v896_v58 = vld [vmem:[#allocation8] sm:$0xff]   ;;  %p1021_p1 = pnand %p1020_p0, %p1014_p11 }
  0x45   :  { %806 = vmatpush3.bf16.msra.mxu1 %v882_v12  ;;  %v893_v55 = vld [vmem:[#allocation8 + $0x18] sm:$0xff]  }
  0x46   :  { %807 = vmatprep.subr.bf16.mxu1 %v1048_v0 }
  0x47   :  { %788 = vmatpush3.bf16.msra.mxu0 %v875_v3 }
  0x48   :  { %789 = vmatprep.subr.bf16.mxu0 %v1048_v0 }
  0x49   :  { %808 = vmatpush3.bf16.msra.mxu1 %v883_v13 }
  0x4a   :  { %809 = vmatprep.subr.bf16.mxu1 %v1048_v0 }
  0x4b   :  { %790 = vmatpush3.bf16.msra.mxu0 %v876_v4 }
  0x4c   :  { %791 = vmatprep.subr.bf16.mxu0 %v1048_v0 }
  0x4d   :  { %810 = vmatpush3.bf16.msra.mxu1 %v884_v14 }
  0x4e   :  { %811 = vmatprep.subr.bf16.mxu1 %v1048_v0 }
  0x4f   :  { %792 = vmatpush3.bf16.msra.mxu0 %v877_v5 }
  0x50   :  { %793 = vmatprep.subr.bf16.mxu0 %v1048_v0 }
  0x51   :  { %812 = vmatpush3.bf16.msra.mxu1 %v885_v15 }
  0x52   :  { %813 = vmatprep.subr.bf16.mxu1 %v1048_v0 }
  0x53   :  { %794 = vmatpush3.bf16.msra.mxu0 %v878_v6 }
  0x54   :  { %795 = vmatprep.subr.bf16.mxu0 %v1048_v0 }
  0x55   :  { %814 = vmatpush3.bf16.msra.mxu1 %v886_v16 }
  0x56   :  { %815 = vmatprep.subr.bf16.mxu1 %v1048_v0 }
  0x57   :  { %796 = vmatpush3.bf16.msra.mxu0 %v879_v7 }
  0x58   :  { %797 = vmatprep.subr.bf16.mxu0 %v1048_v0 }
  0x59   :  { %816 = vmatpush3.bf16.msra.mxu1 %v887_v17 }
  0x5a   :  { %817 = vmatprep.subr.bf16.mxu1 %v1048_v0 }
  0x5b   :  { %798 = vmatpush3.bf16.msra.mxu0 %v880_v8 }
  0x5c   :  { %823 = vmatprep.subr.bf16.mxu0 %v1048_v0 }
  0x5d   :  { %818 = vmatpush3.bf16.msra.mxu1 %v888_v18 }
  0x5e   :  { %800 = vmatmul.mubr.bf16.vlgmr.msra.gmra.mxu0 %v113_v10  ;;  %843 = vmatprep.subr.bf16.mxu1 %v1048_v0 }
  0x5f   :  { %839 = vmatprep.mubr.msk.bf16.mxu0 %vm1049_vm0, %v1048_v0  ;;  %824 = vmatpush3.bf16.msra.mxu0 %v889_v51 }
  0x60   :  { %825 = vmatprep.subr.bf16.mxu0 %v1048_v0 }
  0x63   :  { %826 = vmatpush3.bf16.msra.mxu0 %v890_v52 }
  0x64   :  { %827 = vmatprep.subr.bf16.mxu0 %v1048_v0 }
  0x67   :  { %828 = vmatpush3.bf16.msra.mxu0 %v891_v53 }
  0x68   :  { %829 = vmatprep.subr.bf16.mxu0 %v1048_v0 }
  0x6b   :  { %830 = vmatpush3.bf16.msra.mxu0 %v892_v54 }
  0x6c   :  { %831 = vmatprep.subr.bf16.mxu0 %v1048_v0 }
  0x6f   :  { %832 = vmatpush3.bf16.msra.mxu0 %v893_v55 }
  0x70   :  { %833 = vmatprep.subr.bf16.mxu0 %v1048_v0 }
  0x73   :  { %834 = vmatpush3.bf16.msra.mxu0 %v894_v56 }
  0x74   :  { %835 = vmatprep.subr.bf16.mxu0 %v1048_v0 }
  0x77   :  { %836 = vmatpush3.bf16.msra.mxu0 %v895_v57 }
  0x78   :  { %837 = vmatprep.subr.bf16.mxu0 %v1048_v0 }
  0x7b   :  { %838 = vmatpush3.bf16.msra.mxu0 %v896_v58 }
 0x11e   :  { %v212_v19 = vpop.f32.mrf.mxu0 }
 0x11f   :  { %v218_v20 = vrot.slane %v212_v19, 4  ;;  %v226_v21 = vmul.f32 %v212_v19, %v212_v19 }
 0x120   :  { %v801_v22 = vpop.f32.mrf.mxu0 }
 0x121   :  { %v219_v23 = vadd.f32 %v218_v20, %v212_v19  ;;  %v227_v24 = vrot.slane %v226_v21, 4 }
 0x122   :  { %v215_v25 = vpop.f32.mrf.mxu0 }
 0x123   :  { %v220_v26 = vrot.slane %v219_v23, 2  ;;  %v228_v27 = vadd.f32 %v227_v24, %v226_v21  ;;  %v725_v21 = vld [vmem:[%s1220_s5] ss:$0 sm:$0xff] }
 0x124   :  { %v802_v28 = vpop.f32.mrf.mxu0 }
 0x125   :  { %v221_v29 = vadd.f32 %v220_v26, %v219_v23  ;;  %v229_v30 = vrot.slane %v228_v27, 2  ;;  %v726_v23 = vld [vmem:[%s1221_s6] ss:$0 sm:$0xff] }
 0x126   :  { %v897_v28 = vld [vmem:[#allocation10 + $0x38] sm:$0xff]  }
 0x127   :  { %v222_v31 = vrot.slane %v221_v29, 1  ;;  %v230_v32 = vadd.f32 %v229_v30, %v228_v27  ;;  %v899_v30 = vld [vmem:[#allocation10 + $0x28] sm:$0xff]  }
 0x129   :  { %v223_v33 = vadd.f32 %v222_v31, %v221_v29  ;;  %v231_v34 = vrot.slane %v230_v32, 1  ;;  %v898_v29 = vld [vmem:[#allocation10 + $0x30] sm:$0xff]   ;;  %v900_v31 = vld [vmem:[#allocation10 + $0x20] sm:$0xff]  }
 0x12b   :  { %v225_v35 = vmul.f32 0.125, %v223_v33  ;;  %v232_v36 = vadd.f32 %v231_v34, %v230_v32  ;;  %v901_v32 = vld [vmem:[#allocation10 + $0x18] sm:$0xff]   ;;  %v902_v33 = vld [vmem:[#allocation10 + $0x10] sm:$0xff]   ;;  %v903_v34 = vld [vmem:[#allocation10 + $0x8] sm:$0xff]  }
 0x12d   :  { %v233_v37 = vmul.f32 0.125, %v232_v36  ;;  %v234_v38 = vmul.f32 %v225_v35, %v225_v35  ;;  %v237_v42 = vsub.f32 %v212_v19, %v225_v35  ;;  %v904_v35 = vld [vmem:[#allocation10] sm:$0xff]  }
 0x12f   :  { %v235_v39 = vsub.f32 %v233_v37, %v234_v38 }
 0x131   :  { %v236_v40 = vmax.f32 %v235_v39, 0.0 }
 0x133   :  { %v238_v41 = vadd.f32 0.0001, %v236_v40 }
 0x135   :  { %905 = vrsqrt.f32 %v238_v41 }
 0x142   :  { %v906_v43 = vpop.eup %905 }
 0x143   :  { %v240_v45 = vmul.f32 %v906_v43, %v237_v42 }
 0x145   :  { %v248_v47 = vmul.f32 %v715_v44, %v240_v45 }
 0x147   :  { %v256_v48 = vadd.f32 %v716_v46, %v248_v47 }
 0x149   :  { %v257_v49 = vmax.f32 %v256_v48, 0.0 }
 0x14b   :  { %v258_v50 = vpack.c.bf16 %v257_v49, %v257_v49 }
 0x14d   :  { %820 = vmatmul.mubr.bf16.vlgmr.msra.gmra.mxu1 %v258_v50 }
 0x14e   :  { %859 = vmatprep.mubr.msk.bf16.mxu1 %vm1049_vm0, %v1048_v0  ;;  %844 = vmatpush3.bf16.msra.mxu1 %v897_v28 }
 0x14f   :  { %845 = vmatprep.subr.bf16.mxu1 %v1048_v0 }
 0x152   :  { %846 = vmatpush3.bf16.msra.mxu1 %v898_v29  ;;  %v745_v29 = vld [vmem:[%s1226_s11] ss:$0 sm:$0xff] }
 0x153   :  { %847 = vmatprep.subr.bf16.mxu1 %v1048_v0 }
 0x156   :  { %848 = vmatpush3.bf16.msra.mxu1 %v899_v30 }
 0x157   :  { %849 = vmatprep.subr.bf16.mxu1 %v1048_v0 }
 0x15a   :  { %850 = vmatpush3.bf16.msra.mxu1 %v900_v31  ;;  %v746_v31 = vld [vmem:[%s1227_s12] ss:$0 sm:$0xff] }
 0x15b   :  { %851 = vmatprep.subr.bf16.mxu1 %v1048_v0 }
 0x15e   :  { %852 = vmatpush3.bf16.msra.mxu1 %v901_v32 }
 0x15f   :  { %853 = vmatprep.subr.bf16.mxu1 %v1048_v0 }
 0x162   :  { %854 = vmatpush3.bf16.msra.mxu1 %v902_v33 }
 0x163   :  { %855 = vmatprep.subr.bf16.mxu1 %v1048_v0 }
 0x166   :  { %856 = vmatpush3.bf16.msra.mxu1 %v903_v34 }
 0x167   :  { %857 = vmatprep.subr.bf16.mxu1 %v1048_v0 }
 0x16a   :  { %858 = vmatpush3.bf16.msra.mxu1 %v904_v35 }
 0x20d   :  { %v357_v59 = vpop.f32.mrf.mxu1 }
 0x20e   :  { %v363_v60 = vrot.slane %v357_v59, 4  ;;  %v370_v61 = vmul.f32 %v357_v59, %v357_v59 }
 0x20f   :  { %v821_v62 = vpop.f32.mrf.mxu1 }
 0x210   :  { %v364_v63 = vadd.f32 %v363_v60, %v357_v59  ;;  %v371_v1 = vrot.slane %v370_v61, 4  ;;  %v735_v60 = vld [vmem:[%s1223_s8] ss:$0 sm:$0xff] }
 0x211   :  { %v360_v2 = vpop.f32.mrf.mxu1  ;;  %v736_v62 = vld [vmem:[%s1224_s9] ss:$0 sm:$0xff] }
 0x212   :  { %v365_v3 = vrot.slane %v364_v63, 2  ;;  %v372_v4 = vadd.f32 %v371_v1, %v370_v61 }
 0x213   :  { %v822_v5 = vpop.f32.mrf.mxu1 }
 0x214   :  { %v366_v6 = vadd.f32 %v365_v3, %v364_v63  ;;  %v373_v7 = vrot.slane %v372_v4, 2 }
 0x216   :  { %v367_v8 = vrot.slane %v366_v6, 1  ;;  %v374_v9 = vadd.f32 %v373_v7, %v372_v4 }
 0x218   :  { %v368_v10 = vadd.f32 %v367_v8, %v366_v6  ;;  %v375_v11 = vrot.slane %v374_v9, 1 }
 0x21a   :  { %v369_v12 = vmul.f32 0.125, %v368_v10  ;;  %v376_v13 = vadd.f32 %v375_v11, %v374_v9 }
 0x21c   :  { %v377_v14 = vmul.f32 0.125, %v376_v13  ;;  %v378_v15 = vmul.f32 %v369_v12, %v369_v12  ;;  %v381_v19 = vsub.f32 %v357_v59, %v369_v12 }
 0x21e   :  { %v379_v16 = vsub.f32 %v377_v14, %v378_v15 }
 0x220   :  { %v380_v17 = vmax.f32 %v379_v16, 0.0 }
 0x222   :  { %v382_v18 = vadd.f32 0.0001, %v380_v17 }
 0x224   :  { %907 = vrsqrt.f32 %v382_v18 }
 0x231   :  { %v908_v20 = vpop.eup %907 }
 0x232   :  { %v384_v22 = vmul.f32 %v908_v20, %v381_v19 }
 0x234   :  { %v392_v24 = vmul.f32 %v725_v21, %v384_v22 }
 0x236   :  { %v400_v25 = vadd.f32 %v726_v23, %v392_v24 }
 0x238   :  { %v401_v26 = vmax.f32 %v400_v25, 0.0 }
 0x23a   :  { %v402_v27 = vpack.c.bf16 %v401_v26, %v401_v26 }
 0x23c   :  { %840 = vmatmul.mubr.bf16.vlgmr.msra.gmra.mxu0 %v402_v27 }
 0x2fc   :  { %v501_v36 = vpop.f32.mrf.mxu0 }
 0x2fd   :  { %v507_v37 = vrot.slane %v501_v36, 4  ;;  %v514_v38 = vmul.f32 %v501_v36, %v501_v36 }
 0x2fe   :  { %v841_v39 = vpop.f32.mrf.mxu0 }
 0x2ff   :  { %v508_v40 = vadd.f32 %v507_v37, %v501_v36  ;;  %v515_v41 = vrot.slane %v514_v38, 4 }
 0x300   :  { %v504_v42 = vpop.f32.mrf.mxu0 }
 0x301   :  { %v509_v43 = vrot.slane %v508_v40, 2  ;;  %v516_v44 = vadd.f32 %v515_v41, %v514_v38 }
 0x302   :  { %v842_v45 = vpop.f32.mrf.mxu0 }
 0x303   :  { %v510_v46 = vadd.f32 %v509_v43, %v508_v40  ;;  %v517_v47 = vrot.slane %v516_v44, 2 }
 0x305   :  { %v511_v48 = vrot.slane %v510_v46, 1  ;;  %v518_v49 = vadd.f32 %v517_v47, %v516_v44 }
 0x307   :  { %v512_v50 = vadd.f32 %v511_v48, %v510_v46  ;;  %v519_v51 = vrot.slane %v518_v49, 1 }
 0x309   :  { %v513_v52 = vmul.f32 0.125, %v512_v50  ;;  %v520_v53 = vadd.f32 %v519_v51, %v518_v49 }
 0x30b   :  { %v521_v0 = vmul.f32 0.125, %v520_v53  ;;  %v522_v54 = vmul.f32 %v513_v52, %v513_v52  ;;  %v525_v58 = vsub.f32 %v501_v36, %v513_v52 }
 0x30d   :  { %v523_v55 = vsub.f32 %v521_v0, %v522_v54 }
 0x30f   :  { %v524_v56 = vmax.f32 %v523_v55, 0.0 }
 0x311   :  { %v526_v57 = vadd.f32 0.0001, %v524_v56 }
 0x313   :  { %909 = vrsqrt.f32 %v526_v57 }
 0x320   :  { %v910_v59 = vpop.eup %909 }
 0x321   :  { %v528_v61 = vmul.f32 %v910_v59, %v525_v58 }
 0x323   :  { %v536_v63 = vmul.f32 %v735_v60, %v528_v61 }
 0x325   :  { %v544_v1 = vadd.f32 %v736_v62, %v536_v63 }
 0x327   :  { %v545_v2 = vmax.f32 %v544_v1, 0.0 }
 0x329   :  { %v546_v3 = vpack.c.bf16 %v545_v2, %v545_v2 }
 0x32b   :  { %860 = vmatmul.mubr.bf16.vlgmr.msra.gmra.mxu1 %v546_v3 }
 0x3eb   :  { %v645_v4 = vpop.f32.mrf.mxu1 }
 0x3ec   :  { %v651_v5 = vrot.slane %v645_v4, 4  ;;  %v658_v6 = vmul.f32 %v645_v4, %v645_v4 }
 0x3ed   :  { %v861_v7 = vpop.f32.mrf.mxu1 }
 0x3ee   :  { %v652_v8 = vadd.f32 %v651_v5, %v645_v4  ;;  %v659_v9 = vrot.slane %v658_v6, 4 }
 0x3ef   :  { %v648_v10 = vpop.f32.mrf.mxu1 }
 0x3f0   :  { %v653_v11 = vrot.slane %v652_v8, 2  ;;  %v660_v12 = vadd.f32 %v659_v9, %v658_v6 }
 0x3f1   :  { %v862_v13 = vpop.f32.mrf.mxu1 }
 0x3f2   :  { %v654_v14 = vadd.f32 %v653_v11, %v652_v8  ;;  %v661_v15 = vrot.slane %v660_v12, 2 }
 0x3f4   :  { %v655_v16 = vrot.slane %v654_v14, 1  ;;  %v662_v17 = vadd.f32 %v661_v15, %v660_v12 }
 0x3f6   :  { %v656_v18 = vadd.f32 %v655_v16, %v654_v14  ;;  %v663_v19 = vrot.slane %v662_v17, 1 }
 0x3f8   :  { %v657_v20 = vmul.f32 0.125, %v656_v18  ;;  %v664_v21 = vadd.f32 %v663_v19, %v662_v17 }
 0x3fa   :  { %v665_v22 = vmul.f32 0.125, %v664_v21  ;;  %v666_v23 = vmul.f32 %v657_v20, %v657_v20  ;;  %v669_v27 = vsub.f32 %v645_v4, %v657_v20 }
 0x3fc   :  { %v667_v24 = vsub.f32 %v665_v22, %v666_v23 }
 0x3fe   :  { %v668_v25 = vmax.f32 %v667_v24, 0.0 }
 0x400   :  { %v670_v26 = vadd.f32 0.0001, %v668_v25 }
 0x402   :  { %911 = vrsqrt.f32 %v670_v26 }
 0x40f   :  { %v912_v28 = vpop.eup %911 }
 0x410   :  { %v672_v30 = vmul.f32 %v912_v28, %v669_v27 }
 0x412   :  { %v680_v32 = vmul.f32 %v745_v29, %v672_v30 }
 0x414   :  { %v688_v33 = vadd.f32 %v746_v31, %v680_v32 }
 0x416   :  { %689 = vst [vmem:[#allocation11] sm:$0xff] %v688_v33 }
 0x417   :  { %1024 = shalt.err (!%p1021_p1)
}
 0x418   :  { %699 = dma.vmem_to_hbm [thread:$0]  %s697_s23, 128, %s1228_s13, [#allocation4]  }
 0x419   :  { %1039 = dma.done.wait [#allocation4], 128  }
 0x41a   :  { %1040 = vsyncadd [#allocation4], 4294967168 }
 0x41b   :  { %703 = vsyncpa [#allocation3], 1 }
 0x41c   :  { %704 = vsyncpa [#allocation6], 1 }
 0x41d   :  { %705 = vsyncpa [#allocation9], 1 }
 0x41e   :  { %706 = vsyncpa [#allocation4], 1 }

</bundles_post_ra>
